<compile_context>
chip_gen: v5e
topology: v5e:2x2
jax: 0.10.0
libtpu: 0.0.40
codegen_flags: <defaults>
</compile_context>

<pallas_src>
import functools
import itertools

import jax
import jax.numpy as jnp
from jax.experimental import pallas as pl
from jax.experimental.pallas import tpu as pltpu


def _bilinear_kernel(x_ref, w_ref, out_ref, *, field_size, embedding_size,
                     mxu_dtype):
    # x_ref:   (TB, F*E)  batch tile, all fields flattened along lanes
    # w_ref:   (E, P*E)   per-pair Linear weights, pre-transposed and packed
    #                     along lanes, grouped by the pair's left field
    # out_ref: (TB, P*E)  lane-dense output (combination order)
    F, E = field_size, embedding_size
    off = 0
    for i in range(F - 1):                       # static, unrolled group loop
        n_i = F - 1 - i                          # pairs with left field i
        width = n_i * E
        vi = x_ref[:, i * E:(i + 1) * E]         # (TB, E) left field
        vj = x_ref[:, (i + 1) * E:F * E]         # (TB, n_i*E) right fields
        wk = w_ref[:, off:off + width]           # (E, n_i*E) stacked W_k^T
        if mxu_dtype is not None:
            vi = vi.astype(mxu_dtype)            # cheap VPU cast; weights are
                                                 # already cast in the wrapper
        y = jnp.dot(vi, wk, preferred_element_type=jnp.float32)   # wide MXU
        out_ref[:, off:off + width] = (
            y * vj.astype(jnp.float32)).astype(out_ref.dtype)
        off += width


def _pick_batch_tile(B, F, E, P, x_itemsize, out_itemsize, w_itemsize,
                     requested):
    """Batch tile that fits a ~48 MiB VMEM budget and keeps several grid tiles."""
    weight_vmem = E * P * E * w_itemsize                 # resident weights
    per_row = 2 * (F * E * x_itemsize + P * E * out_itemsize)  # 2x-buffered
    budget = 48 * (1 << 20) - 2 * weight_vmem
    tb_cap = max(8, budget // max(per_row, 1))
    tb = min(requested, B, tb_cap)
    # Keep >= ~8 grid tiles on large batches so megacore (v7x: 2 TCs) has work
    # and the pipeline can hide the large output-block DMA.
    tb = min(tb, max(16, pl.cdiv(B, 8)))
    if tb < B:  # partial tiling: honour the (8, 128) sublane constraint
        tb = max(8, (tb // 8) * 8)
        if tb >= 16:
            tb = (tb // 16) * 16                  # bf16 sublane packing
    return int(tb)


def bilinear_interaction(x, weights, *, batch_tile=256,
                         mxu_dtype=jnp.bfloat16, out_dtype=None):
    """x: (B, F, E); weights: (P, E, E) with weights[k] = W_k (out, in) of the
    k-th pair's nn.Linear.  Returns (B, P, E), matching torch.cat(p, dim=1)."""
    B, F, E = x.shape
    P = F * (F - 1) // 2
    assert weights.shape == (P, E, E), weights.shape
    out_dtype = x.dtype if out_dtype is None else out_dtype

    # Flatten fields into lanes (free reshape, last-two-dims merge).
    x2d = x.reshape(B, F * E)
    # nn.Linear is v @ W^T: pre-transpose each W_k and pack all pairs along the
    # lane dim.  w_packed[:, k*E + b] = W_k[b, :]  (combination order ==
    # grouped by left field).
    w_packed = jnp.transpose(weights, (2, 0, 1)).reshape(E, P * E)
    if mxu_dtype is not None:
        w_packed = w_packed.astype(mxu_dtype)

    x_itemsize = jnp.dtype(x2d.dtype).itemsize
    w_itemsize = jnp.dtype(w_packed.dtype).itemsize
    o_itemsize = jnp.dtype(out_dtype).itemsize

    tb = _pick_batch_tile(B, F, E, P, x_itemsize, o_itemsize, w_itemsize,
                          batch_tile)
    grid = (pl.cdiv(B, tb),)

    # Explicit VMEM accounting: double-buffered x / out blocks + weights
    # (counted twice in case single-buffering is unavailable) + headroom.
    vmem_need = (2 * tb * (F * E * x_itemsize + P * E * o_itemsize)
                 + 2 * E * P * E * w_itemsize)
    vmem_limit = int(min(128 * (1 << 20), vmem_need + vmem_need // 4 + (4 << 20)))

    kernel = functools.partial(_bilinear_kernel, field_size=F,
                               embedding_size=E, mxu_dtype=mxu_dtype)

    cost = pl.CostEstimate(
        flops=2 * B * P * E * E,
        transcendentals=0,
        bytes_accessed=(B * F * E * x_itemsize
                        + P * E * E * w_itemsize
                        + B * P * E * o_itemsize),
    )

    def _build(single_buffer_weights):
        w_kwargs = {}
        if single_buffer_weights:
            # Constant index_map -> one resident copy is enough; saves
            # P*E*E*itemsize of VMEM (matters on v7x's 64 MiB).
            w_kwargs["pipeline_mode"] = pl.Buffered(1)
        return pl.pallas_call(
            kernel,
            grid=grid,
            in_specs=[
                pl.BlockSpec((tb, F * E), lambda b: (b, 0)),   # batch tile of x
                pl.BlockSpec((E, P * E), lambda b: (0, 0), **w_kwargs),
            ],
            out_specs=pl.BlockSpec((tb, P * E), lambda b: (b, 0)),
            out_shape=jax.ShapeDtypeStruct((B, P * E), out_dtype),
            compiler_params=pltpu.CompilerParams(
                dimension_semantics=("parallel",),
                vmem_limit_bytes=vmem_limit),
            cost_estimate=cost,
        )

    try:
        out2d = _build(True)(x2d, w_packed)
    except Exception:
        # Fallback if this JAX version rejects pipeline_mode=pl.Buffered(1).
        out2d = _build(False)(x2d, w_packed)

    return out2d.reshape(B, P, E)   # free reshape, no transpose


def bilinear_interaction_reference(x, weights, pairs, mxu_dtype=None):
    outs = []
    for k, (i, j) in enumerate(pairs):
        vi = x[:, i, :]
        vj = x[:, j, :]
        w = weights[k]
        if mxu_dtype is not None:
            vi = vi.astype(mxu_dtype)
            w = w.astype(mxu_dtype)
        y = jnp.dot(vi, w.T, preferred_element_type=jnp.float32)
        outs.append(y.astype(jnp.float32) * vj)
    return jnp.stack(outs, axis=1)


if __name__ == "__main__":
    batch = 2
    field_size = 4
    embedding_size = 32

    pairs = list(itertools.combinations(range(field_size), 2))
    num_pairs = len(pairs)  # 6

    key = jax.random.PRNGKey(0)
    k_x, k_w = jax.random.split(key)

    x = jax.random.normal(
        k_x, (batch, field_size, embedding_size), dtype=jnp.float32)
    # Deterministic synthetic init of the P bias-free Linear weights (E, E).
    weights = 0.05 * jax.random.normal(
        k_w, (num_pairs, embedding_size, embedding_size), dtype=jnp.float32)

    # 1) Exact f32 path (matches the PyTorch module bit-for-bit up to fp noise).
    out_f32 = bilinear_interaction(x, weights, mxu_dtype=None)
    out_f32 = jax.block_until_ready(out_f32)
    ref_f32 = bilinear_interaction_reference(x, weights, pairs)
    assert out_f32.shape == (batch, num_pairs, embedding_size), out_f32.shape
    assert jnp.allclose(out_f32, ref_f32, atol=1e-5, rtol=1e-5), \
        "f32 mismatch vs reference"

    # 2) Default bf16-MXU path (HBM-bound workload; bf16 operands, f32 accum).
    out_bf16 = bilinear_interaction(x, weights)   # mxu_dtype=bf16, f32 output
    out_bf16 = jax.block_until_ready(out_bf16)
    ref_bf16 = bilinear_interaction_reference(x, weights, pairs,
                                              mxu_dtype=jnp.bfloat16)
    assert jnp.allclose(out_bf16, ref_bf16, atol=1e-3, rtol=1e-3), \
        "bf16 mismatch vs bf16 reference"

    print("KERNEL_OK")
</pallas_src>

<mosaic_0001>
module attributes {stable_mosaic.version = 11 : i64} {
  func.func @_bilinear_kernel(%arg0: i32, %arg1: memref<2x128xf32, #tpu.memory_space<vmem>>, %arg2: memref<32x192xf32, #tpu.memory_space<vmem>>, %arg3: memref<2x192xf32, #tpu.memory_space<vmem>>) attributes {dimension_semantics = [#tpu.dimension_semantics<parallel>], iteration_bounds = array<i64: 1>, scalar_prefetch = 0 : i64, scratch_operands = 0 : i64, tpu.core_type = #tpu.core_type<tc>, window_params = [{transform_indices = @transform_0, window_bounds = array<i64: 2, 128>}, {pipeline_mode = #tpu.pipeline_mode<synchronous>, transform_indices = @transform_1, window_bounds = array<i64: 32, 192>}, {transform_indices = @transform_2, window_bounds = array<i64: 2, 192>}]} {
    %c0 = arith.constant 0 : index
    %c0_0 = arith.constant 0 : index
    %0 = vector.load %arg1[%c0, %c0_0] : memref<2x128xf32, #tpu.memory_space<vmem>>, vector<2x32xf32>
    %c0_1 = arith.constant 0 : index
    %c32 = arith.constant 32 : index
    %1 = vector.load %arg1[%c0_1, %c32] : memref<2x128xf32, #tpu.memory_space<vmem>>, vector<2x96xf32>
    %c0_2 = arith.constant 0 : index
    %c0_3 = arith.constant 0 : index
    %2 = vector.load %arg2[%c0_2, %c0_3] : memref<32x192xf32, #tpu.memory_space<vmem>>, vector<32x96xf32>
    %cst = arith.constant dense<0.000000e+00> : vector<2x96xf32>
    %3 = tpu.matmul %0, %2, %cst {dimension_numbers = #tpu.dot_dimension_numbers<[1], [0], [0], [1], [0, 0, 1, 1], [], []>} : vector<2x32xf32>, vector<32x96xf32>, vector<2x96xf32> -> vector<2x96xf32>
    %4 = arith.mulf %3, %1 : vector<2x96xf32>
    %c0_4 = arith.constant 0 : index
    %c0_5 = arith.constant 0 : index
    %5 = vector.load %arg3[%c0_4, %c0_5] : memref<2x192xf32, #tpu.memory_space<vmem>>, vector<2x96xf32>
    tpu.vector_store %arg3[%c0_4, %c0_5], %4 {strides = array<i32>} : memref<2x192xf32, #tpu.memory_space<vmem>>, vector<2x96xf32>,
    %c0_6 = arith.constant 0 : index
    %c32_7 = arith.constant 32 : index
    %6 = vector.load %arg1[%c0_6, %c32_7] : memref<2x128xf32, #tpu.memory_space<vmem>>, vector<2x32xf32>
    %c0_8 = arith.constant 0 : index
    %c64 = arith.constant 64 : index
    %7 = vector.load %arg1[%c0_8, %c64] : memref<2x128xf32, #tpu.memory_space<vmem>>, vector<2x64xf32>
    %c0_9 = arith.constant 0 : index
    %c96 = arith.constant 96 : index
    %8 = vector.load %arg2[%c0_9, %c96] : memref<32x192xf32, #tpu.memory_space<vmem>>, vector<32x64xf32>
    %cst_10 = arith.constant dense<0.000000e+00> : vector<2x64xf32>
    %9 = tpu.matmul %6, %8, %cst_10 {dimension_numbers = #tpu.dot_dimension_numbers<[1], [0], [0], [1], [0, 0, 1, 1], [], []>} : vector<2x32xf32>, vector<32x64xf32>, vector<2x64xf32> -> vector<2x64xf32>
    %10 = arith.mulf %9, %7 : vector<2x64xf32>
    %c0_11 = arith.constant 0 : index
    %c96_12 = arith.constant 96 : index
    %11 = vector.load %arg3[%c0_11, %c96_12] : memref<2x192xf32, #tpu.memory_space<vmem>>, vector<2x64xf32>
    tpu.vector_store %arg3[%c0_11, %c96_12], %10 {strides = array<i32>} : memref<2x192xf32, #tpu.memory_space<vmem>>, vector<2x64xf32>,
    %c0_13 = arith.constant 0 : index
    %c64_14 = arith.constant 64 : index
    %12 = vector.load %arg1[%c0_13, %c64_14] : memref<2x128xf32, #tpu.memory_space<vmem>>, vector<2x32xf32>
    %c0_15 = arith.constant 0 : index
    %c96_16 = arith.constant 96 : index
    %13 = vector.load %arg1[%c0_15, %c96_16] : memref<2x128xf32, #tpu.memory_space<vmem>>, vector<2x32xf32>
    %c0_17 = arith.constant 0 : index
    %c160 = arith.constant 160 : index
    %14 = vector.load %arg2[%c0_17, %c160] : memref<32x192xf32, #tpu.memory_space<vmem>>, vector<32x32xf32>
    %cst_18 = arith.constant dense<0.000000e+00> : vector<2x32xf32>
    %15 = tpu.matmul %12, %14, %cst_18 {dimension_numbers = #tpu.dot_dimension_numbers<[1], [0], [0], [1], [0, 0, 1, 1], [], []>} : vector<2x32xf32>, vector<32x32xf32>, vector<2x32xf32> -> vector<2x32xf32>
    %16 = arith.mulf %15, %13 : vector<2x32xf32>
    %c0_19 = arith.constant 0 : index
    %c160_20 = arith.constant 160 : index
    %17 = vector.load %arg3[%c0_19, %c160_20] : memref<2x192xf32, #tpu.memory_space<vmem>>, vector<2x32xf32>
    tpu.vector_store %arg3[%c0_19, %c160_20], %16 {strides = array<i32>} : memref<2x192xf32, #tpu.memory_space<vmem>>, vector<2x32xf32>,
    return
  }
  func.func @transform_0(%arg0: i32) -> (i32, i32) {
    %c0_i32 = arith.constant 0 : i32
    %c0_i32_0 = arith.constant 0 : i32
    return %arg0, %c0_i32 : i32, i32
  }
  func.func @transform_1(%arg0: i32) -> (i32, i32) {
    %c0_i32 = arith.constant 0 : i32
    %c0_i32_0 = arith.constant 0 : i32
    %c0_i32_1 = arith.constant 0 : i32
    return %c0_i32, %c0_i32_0 : i32, i32
  }
  func.func @transform_2(%arg0: i32) -> (i32, i32) {
    %c0_i32 = arith.constant 0 : i32
    %c0_i32_0 = arith.constant 0 : i32
    return %arg0, %c0_i32 : i32, i32
  }
}

module attributes {stable_mosaic.version = 11 : i64} {
  func.func @_bilinear_kernel(%arg0: i32, %arg1: memref<2x128xf32, #tpu.memory_space<vmem>>, %arg2: memref<32x192xf32, #tpu.memory_space<vmem>>, %arg3: memref<2x192xf32, #tpu.memory_space<vmem>>) attributes {dimension_semantics = [#tpu.dimension_semantics<parallel>], iteration_bounds = array<i64: 1>, scalar_prefetch = 0 : i64, scratch_operands = 0 : i64, tpu.core_type = #tpu.core_type<tc>, window_params = [{transform_indices = @transform_0, window_bounds = array<i64: 2, 128>}, {pipeline_mode = #tpu.pipeline_mode<synchronous>, transform_indices = @transform_1, window_bounds = array<i64: 32, 192>}, {transform_indices = @transform_2, window_bounds = array<i64: 2, 192>}]} {
    %c0 = arith.constant 0 : index
    %c0_0 = arith.constant 0 : index
    %0 = vector.load %arg1[%c0, %c0_0] : memref<2x128xf32, #tpu.memory_space<vmem>>, vector<2x32xf32>
    %c0_1 = arith.constant 0 : index
    %c32 = arith.constant 32 : index
    %1 = vector.load %arg1[%c0_1, %c32] : memref<2x128xf32, #tpu.memory_space<vmem>>, vector<2x96xf32>
    %c0_2 = arith.constant 0 : index
    %c0_3 = arith.constant 0 : index
    %2 = vector.load %arg2[%c0_2, %c0_3] : memref<32x192xf32, #tpu.memory_space<vmem>>, vector<32x96xf32>
    %cst = arith.constant dense<0.000000e+00> : vector<2x96xf32>
    %3 = tpu.matmul %0, %2, %cst {dimension_numbers = #tpu.dot_dimension_numbers<[1], [0], [0], [1], [0, 0, 1, 1], [], []>} : vector<2x32xf32>, vector<32x96xf32>, vector<2x96xf32> -> vector<2x96xf32>
    %4 = arith.mulf %3, %1 : vector<2x96xf32>
    %c0_4 = arith.constant 0 : index
    %c0_5 = arith.constant 0 : index
    %5 = vector.load %arg3[%c0_4, %c0_5] : memref<2x192xf32, #tpu.memory_space<vmem>>, vector<2x96xf32>
    tpu.vector_store %arg3[%c0_4, %c0_5], %4 {strides = array<i32>} : memref<2x192xf32, #tpu.memory_space<vmem>>, vector<2x96xf32>,
    %c0_6 = arith.constant 0 : index
    %c32_7 = arith.constant 32 : index
    %6 = vector.load %arg1[%c0_6, %c32_7] : memref<2x128xf32, #tpu.memory_space<vmem>>, vector<2x32xf32>
    %c0_8 = arith.constant 0 : index
    %c64 = arith.constant 64 : index
    %7 = vector.load %arg1[%c0_8, %c64] : memref<2x128xf32, #tpu.memory_space<vmem>>, vector<2x64xf32>
    %c0_9 = arith.constant 0 : index
    %c96 = arith.constant 96 : index
    %8 = vector.load %arg2[%c0_9, %c96] : memref<32x192xf32, #tpu.memory_space<vmem>>, vector<32x64xf32>
    %cst_10 = arith.constant dense<0.000000e+00> : vector<2x64xf32>
    %9 = tpu.matmul %6, %8, %cst_10 {dimension_numbers = #tpu.dot_dimension_numbers<[1], [0], [0], [1], [0, 0, 1, 1], [], []>} : vector<2x32xf32>, vector<32x64xf32>, vector<2x64xf32> -> vector<2x64xf32>
    %10 = arith.mulf %9, %7 : vector<2x64xf32>
    %c0_11 = arith.constant 0 : index
    %c96_12 = arith.constant 96 : index
    %11 = vector.load %arg3[%c0_11, %c96_12] : memref<2x192xf32, #tpu.memory_space<vmem>>, vector<2x64xf32>
    tpu.vector_store %arg3[%c0_11, %c96_12], %10 {strides = array<i32>} : memref<2x192xf32, #tpu.memory_space<vmem>>, vector<2x64xf32>,
    %c0_13 = arith.constant 0 : index
    %c64_14 = arith.constant 64 : index
    %12 = vector.load %arg1[%c0_13, %c64_14] : memref<2x128xf32, #tpu.memory_space<vmem>>, vector<2x32xf32>
    %c0_15 = arith.constant 0 : index
    %c96_16 = arith.constant 96 : index
    %13 = vector.load %arg1[%c0_15, %c96_16] : memref<2x128xf32, #tpu.memory_space<vmem>>, vector<2x32xf32>
    %c0_17 = arith.constant 0 : index
    %c160 = arith.constant 160 : index
    %14 = vector.load %arg2[%c0_17, %c160] : memref<32x192xf32, #tpu.memory_space<vmem>>, vector<32x32xf32>
    %cst_18 = arith.constant dense<0.000000e+00> : vector<2x32xf32>
    %15 = tpu.matmul %12, %14, %cst_18 {dimension_numbers = #tpu.dot_dimension_numbers<[1], [0], [0], [1], [0, 0, 1, 1], [], []>} : vector<2x32xf32>, vector<32x32xf32>, vector<2x32xf32> -> vector<2x32xf32>
    %16 = arith.mulf %15, %13 : vector<2x32xf32>
    %c0_19 = arith.constant 0 : index
    %c160_20 = arith.constant 160 : index
    %17 = vector.load %arg3[%c0_19, %c160_20] : memref<2x192xf32, #tpu.memory_space<vmem>>, vector<2x32xf32>
    tpu.vector_store %arg3[%c0_19, %c160_20], %16 {strides = array<i32>} : memref<2x192xf32, #tpu.memory_space<vmem>>, vector<2x32xf32>,
    return
  }
  func.func @transform_0(%arg0: i32) -> (i32, i32) {
    %c0_i32 = arith.constant 0 : i32
    %c0_i32_0 = arith.constant 0 : i32
    return %arg0, %c0_i32 : i32, i32
  }
  func.func @transform_1(%arg0: i32) -> (i32, i32) {
    %c0_i32 = arith.constant 0 : i32
    %c0_i32_0 = arith.constant 0 : i32
    %c0_i32_1 = arith.constant 0 : i32
    return %c0_i32, %c0_i32_0 : i32, i32
  }
  func.func @transform_2(%arg0: i32) -> (i32, i32) {
    %c0_i32 = arith.constant 0 : i32
    %c0_i32_0 = arith.constant 0 : i32
    return %arg0, %c0_i32 : i32, i32
  }
}

</mosaic_0001>

<bundles_post_ra>
// kernel: tpu_custom_call.1
= control target key start
LH: loop header
LB: loop body
LE: loop exit
PB: predicated region body
PF: predicated region fallthrough
CT: control target
= control target key end

     0   :  { %7 = vsyncpa [#allocation3], 0  ;;  %s401_s0 = inlined_call_operand.hbm [shape: f32[2,128], index: 0, kind: input, shape index: {}]   ;;  %s402_s1 = inlined_call_operand.hbm [shape: f32[32,192], index: 1, kind: input, shape index: {}]   ;;  %s403_s2 = inlined_call_operand.hbm [shape: f32[2,192], index: 2, kind: output, shape index: {}]  }
   0x1   :  { %8 = vsyncpa [#allocation6], 0 }
   0x2   :  { %9 = vsyncpa [#allocation4], 0  ;;  %s15_s11 = sshll.u32 %s401_s0, 4  ;;  %s351_s12 = smov [#allocation2]   ;;  %s16_s11 = int_to_ptr.hbm [resolvable:$true] %s15_s11 }
   0x3   :  { %s17_s13 = sshll.u32 %s351_s12, 4  ;;  %s25_s16 = sshll.u32 %s402_s1, 4  ;;  %s18_s13 = int_to_ptr.vmem [resolvable:$true] %s17_s13  ;;  %s26_s16 = int_to_ptr.hbm [resolvable:$true] %s25_s16 }
   0x4   :  { %20 = dma.hbm_to_vmem [thread:$0]  %s16_s11, 32, %s18_s13, [#allocation3]  }
   0x5   :  { %s352_s17 = smov [#allocation5]   ;;  %s353_s19 = smov 256  }
   0x6   :  { %s27_s18 = sshll.u32 %s352_s17, 4  ;;  %s354_s20 = smov 16   ;;  %s28_s18 = int_to_ptr.vmem [resolvable:$true] %s27_s18 }
   0x7   :  { %33 = dma.hbm_to_vmem [thread:$0]  %s26_s16, 1024, %s28_s18, [#allocation6], %s353_s19, %s353_s19, %s354_s20  }
   0x8   :  { %345 = dma.done.wait [#allocation3], 32  }
   0x9   :  { %346 = vsyncadd [#allocation3], 4294967264 }
   0xa   :  { %347 = dma.done.wait [#allocation6], 1024  }
   0xb   :  { %348 = vsyncadd [#allocation6], 4294966272  ;;  %v161_v0 = vld [vmem:[#allocation5 + $0x28] sm:$0xff]  ;;  %v162_v1 = vld [vmem:[#allocation5 + $0x38] sm:$0xff]  ;;  %s355_s0 = smov 96   ;;  %s356_s1 = smov 32  }
   0xc   :  { %v82_v2 = vld [vmem:[#allocation5 + $0x20] sm:$0xff]  ;;  %v243_v3 = vpack.i.bf16 %v161_v0, %v162_v1  ;;  %v84_v5 = vld [vmem:[#allocation5 + $0x30] sm:$0xff]  ;;  %v160_v6 = vld [vmem:[#allocation5 + $0x18] sm:$0xff]  ;;  %s357_s21 = smov 64   ;;  %vm47_vm0 = vcmask 261120   ;;  %vm75_vm1 = vcmask 779264  }
   0xd   :  { %v253_v4 = vpack.i.bf16 %v161_v0, %v82_v2  ;;  %v80_v7 = vld [vmem:[#allocation5 + $0x10] sm:$0xff]  ;;  %63 = vmatpush.msra.mxu0 %v84_v5  ;;  %v159_v9 = vld [vmem:[#allocation5 + $0x8] sm:$0xff]  ;;  %v78_v10 = vld [vmem:[#allocation5] sm:$0xff]  ;;  %v248_v11 = vpack.i.bf16 %v162_v1, %v84_v5  ;;  %vm154_vm2 = vcmask 1042176   ;;  %vm155_vm3 = vcmask 257026   ;;  %s358_s22 = smov [#allocation7]  }
   0xe   :  { %244 = vrot.lane.b32.xlu0 %v243_v3, %s355_s0  ;;  %v263_v8 = vpack.i.bf16 %v160_v6, %v80_v7  ;;  %v258_v12 = vpack.i.bf16 %v159_v9, %v160_v6  ;;  %v268_v13 = vpack.i.bf16 %v159_v9, %v78_v10  ;;  %v158_v14 = vld [vmem:[#allocation2] sm:$0x3]  ;;  %vm151_vm4 = vcmask 785408   ;;  %vm156_vm5 = vmor %vm155_vm3, %vm154_vm2  ;;  %s219_s23 = sshll.u32 %s358_s22, 4  ;;  %s221_s26 = sshll.u32 %s403_s2, 4  ;;  %s220_s23 = int_to_ptr.vmem [resolvable:$true] %s219_s23  ;;  %s222_s26 = int_to_ptr.hbm [resolvable:$true] %s221_s26 }
   0xf   :  { %254 = vrot.lane.b32.xlu1 %v253_v4, %s356_s1  ;;  %64 = vmatpush.msra.mxu0 %v82_v2  ;;  %v77_v15 = vld [vmem:[#allocation2] sm:$0x3]  ;;  %vm212_vm6 = vcmask 517376  }
  0x10   :  { %264 = vrot.lane.b32.xlu2 %v263_v8, %s356_s1  ;;  %v42_v16 = vld [vmem:[#allocation2] sm:$0x3] }
  0x11   :  { %65 = vmatpush.msra.mxu0 %v80_v7 }
  0x13   :  { %66 = vmatpush.msra.mxu0 %v78_v10 }
  0x14   :  { %232 = vmatmul.msk.f32.vlgmr.msra.gmra.mxu0 %vm47_vm0, %v42_v16 }
  0x16   :  { %249 = vrot.lane.b32.xlu0 %v248_v11, %s356_s1 }
  0x17   :  { %259 = vrot.lane.b32.xlu1 %v258_v12, %s355_s0 }
  0x18   :  { %269 = vrot.lane.b32.xlu2 %v268_v13, %s356_s1 }
  0x1e   :  { %164 = vrot.lane.b32.xlu0 %v158_v14, %s357_s21 }
  0x1f   :  { %87 = vrot.lane.b32.xlu1 %v77_v15, %s355_s0 }
  0x20   :  { %143 = vrot.lane.b32.xlu2 %v77_v15, %s357_s21 }
  0x26   :  { %204 = vrot.lane.b32.xlu0 %v158_v14, %s356_s1 }
  0x27   :  { %71 = vrot.lane.b32.xlu1 %v42_v16, %s355_s0 }
  0x6a   :  { %v265_v17 = vpop.permute.xlu2 %264 }
  0x6b   :  { %v267_v27 = vunpack.i.h.bf16 %v265_v17  ;;  %v266_v28 = vunpack.i.l.bf16 %v265_v17 }
  0x6d   :  { %v114_v37 = vsel %vm47_vm0, %v266_v28, %v267_v27 }
  0x72   :  { %v270_v22 = vpop.permute.xlu2 %269 }
  0x73   :  { %v272_v34 = vunpack.i.h.bf16 %v270_v22  ;;  %v271_v35 = vunpack.i.l.bf16 %v270_v22 }
  0x75   :  { %v113_v38 = vsel %vm47_vm0, %v271_v35, %v272_v34 }
  0x7a   :  { %v144_v41 = vpop.permute.xlu2 %143 }
  0x80   :  { %v245_v18 = vpop.permute.xlu0 %244 }
  0x81   :  { %v255_v19 = vpop.permute.xlu1 %254  ;;  %v246_v20 = vunpack.i.l.bf16 %v245_v18  ;;  %v247_v21 = vunpack.i.h.bf16 %v245_v18 }
  0x82   :  { %v257_v23 = vunpack.i.h.bf16 %v255_v19  ;;  %v256_v24 = vunpack.i.l.bf16 %v255_v19 }
  0x83   :  { %196 = vmatpush.msra.mxu2 %v246_v20 }
  0x84   :  { %v115_v36 = vsel %vm47_vm0, %v256_v24, %v257_v23 }
  0x85   :  { %197 = vmatpush.msra.mxu2 %v247_v21 }
  0x88   :  { %v250_v25 = vpop.permute.xlu0 %249 }
  0x89   :  { %v260_v26 = vpop.permute.xlu1 %259  ;;  %v252_v29 = vunpack.i.h.bf16 %v250_v25  ;;  %v251_v30 = vunpack.i.l.bf16 %v250_v25 }
  0x8a   :  { %v261_v31 = vunpack.i.l.bf16 %v260_v26  ;;  %v262_v32 = vunpack.i.h.bf16 %v260_v26 }
  0x8b   :  { %v116_v33 = vsel %vm47_vm0, %v251_v30, %v252_v29 }
  0x8c   :  { %198 = vmatpush.msra.mxu2 %v261_v31  ;;  %135 = vmatpush.msra.mxu1 %v116_v33 }
  0x8e   :  { %199 = vmatpush.msra.mxu2 %v262_v32  ;;  %136 = vmatpush.msra.mxu1 %v115_v36 }
  0x90   :  { %v165_v39 = vpop.permute.xlu0 %164  ;;  %137 = vmatpush.msra.mxu1 %v114_v37 }
  0x91   :  { %v88_v40 = vpop.permute.xlu1 %87  ;;  %234 = vmatmul.msk.f32.vlgmr.msra.gmra.mxu2 %vm47_vm0, %v165_v39  ;;  %v68_v48 = vpop.f32.mrf.mxu0 }
  0x92   :  { %138 = vmatpush.msra.mxu1 %v113_v38 }
  0x93   :  { %233 = vmatmul.msk.f32.vlgmr.msra.gmra.mxu1 %vm47_vm0, %v88_v40 }
  0x98   :  { %v205_v44 = vpop.permute.xlu0 %204 }
  0x99   :  { %v72_v47 = vpop.permute.xlu1 %71 }
  0x9a   :  { %v74_v49 = vmul.f32 %v72_v47, %v68_v48 }
  0x9c   :  { %76 = vst.msk [vmem:[#allocation7] sm:$0x3] %vm75_vm1, %v74_v49 }
 0x110   :  { %v140_v42 = vpop.f32.mrf.mxu1 }
 0x111   :  { %v146_v43 = vmul.f32 %v144_v41, %v140_v42 }
 0x113   :  { %148 = vrot.lane.b32.xlu2 %v146_v43, %s355_s0 }
 0x114   :  { %v201_v45 = vpop.f32.mrf.mxu2 }
 0x115   :  { %v207_v46 = vmul.f32 %v205_v44, %v201_v45 }
 0x117   :  { %209 = vrot.lane.b32.xlu0 %v207_v46, %s356_s1 }
 0x16d   :  { %v149_v50 = vpop.permute.xlu2 %148 }
 0x16e   :  { %v150_v51 = vrot.slane %v149_v50, 6 }
 0x170   :  { %v152_v52 = vsel %vm151_vm4, %v150_v51, %v149_v50 }
 0x171   :  { %157 = vst.msk [vmem:[#allocation7] sm:$0xf] %vm156_vm5, %v152_v52 }
 0x189   :  { %v210_v53 = vpop.permute.xlu0 %209 }
 0x18a   :  { %213 = vst.msk [vmem:[#allocation7 + $0x2] sm:$0x3] %vm212_vm6, %v210_v53 }
 0x18b   :  { %224 = dma.vmem_to_hbm [thread:$0]  %s220_s23, 64, %s222_s26, [#allocation4]  }
 0x18c   :  { %349 = dma.done.wait [#allocation4], 64  }
 0x18d   :  { %350 = vsyncadd [#allocation4], 4294967232 }
 0x18e   :  { %229 = vsyncpa [#allocation3], 1 }
 0x18f   :  { %230 = vsyncpa [#allocation6], 1 }
 0x190   :  { %231 = vsyncpa [#allocation4], 1 }

// kernel: tpu_custom_call.1
= control target key start
LH: loop header
LB: loop body
LE: loop exit
PB: predicated region body
PF: predicated region fallthrough
CT: control target
= control target key end

     0   :  { %7 = vsyncpa [#allocation3], 0  ;;  %s401_s0 = inlined_call_operand.hbm [shape: f32[2,128], index: 0, kind: input, shape index: {}]   ;;  %s402_s1 = inlined_call_operand.hbm [shape: f32[32,192], index: 1, kind: input, shape index: {}]   ;;  %s403_s2 = inlined_call_operand.hbm [shape: f32[2,192], index: 2, kind: output, shape index: {}]  }
   0x1   :  { %8 = vsyncpa [#allocation6], 0 }
   0x2   :  { %9 = vsyncpa [#allocation4], 0  ;;  %s15_s11 = sshll.u32 %s401_s0, 4  ;;  %s351_s12 = smov [#allocation2]   ;;  %s16_s11 = int_to_ptr.hbm [resolvable:$true] %s15_s11 }
   0x3   :  { %s17_s13 = sshll.u32 %s351_s12, 4  ;;  %s25_s16 = sshll.u32 %s402_s1, 4  ;;  %s18_s13 = int_to_ptr.vmem [resolvable:$true] %s17_s13  ;;  %s26_s16 = int_to_ptr.hbm [resolvable:$true] %s25_s16 }
   0x4   :  { %20 = dma.hbm_to_vmem [thread:$0]  %s16_s11, 32, %s18_s13, [#allocation3]  }
   0x5   :  { %s352_s17 = smov [#allocation5]   ;;  %s353_s19 = smov 256  }
   0x6   :  { %s27_s18 = sshll.u32 %s352_s17, 4  ;;  %s354_s20 = smov 16   ;;  %s28_s18 = int_to_ptr.vmem [resolvable:$true] %s27_s18 }
   0x7   :  { %33 = dma.hbm_to_vmem [thread:$0]  %s26_s16, 1024, %s28_s18, [#allocation6], %s353_s19, %s353_s19, %s354_s20  }
   0x8   :  { %345 = dma.done.wait [#allocation3], 32  }
   0x9   :  { %346 = vsyncadd [#allocation3], 4294967264 }
   0xa   :  { %347 = dma.done.wait [#allocation6], 1024  }
   0xb   :  { %348 = vsyncadd [#allocation6], 4294966272  ;;  %v161_v0 = vld [vmem:[#allocation5 + $0x28] sm:$0xff]  ;;  %v162_v1 = vld [vmem:[#allocation5 + $0x38] sm:$0xff]  ;;  %s355_s0 = smov 96   ;;  %s356_s1 = smov 32  }
   0xc   :  { %v82_v2 = vld [vmem:[#allocation5 + $0x20] sm:$0xff]  ;;  %v243_v3 = vpack.i.bf16 %v161_v0, %v162_v1  ;;  %v84_v5 = vld [vmem:[#allocation5 + $0x30] sm:$0xff]  ;;  %v160_v6 = vld [vmem:[#allocation5 + $0x18] sm:$0xff]  ;;  %s357_s21 = smov 64   ;;  %vm47_vm0 = vcmask 261120   ;;  %vm75_vm1 = vcmask 779264  }
   0xd   :  { %v253_v4 = vpack.i.bf16 %v161_v0, %v82_v2  ;;  %v80_v7 = vld [vmem:[#allocation5 + $0x10] sm:$0xff]  ;;  %63 = vmatpush.msra.mxu0 %v84_v5  ;;  %v159_v9 = vld [vmem:[#allocation5 + $0x8] sm:$0xff]  ;;  %v78_v10 = vld [vmem:[#allocation5] sm:$0xff]  ;;  %v248_v11 = vpack.i.bf16 %v162_v1, %v84_v5  ;;  %vm154_vm2 = vcmask 1042176   ;;  %vm155_vm3 = vcmask 257026   ;;  %s358_s22 = smov [#allocation7]  }
   0xe   :  { %244 = vrot.lane.b32.xlu0 %v243_v3, %s355_s0  ;;  %v263_v8 = vpack.i.bf16 %v160_v6, %v80_v7  ;;  %v258_v12 = vpack.i.bf16 %v159_v9, %v160_v6  ;;  %v268_v13 = vpack.i.bf16 %v159_v9, %v78_v10  ;;  %v158_v14 = vld [vmem:[#allocation2] sm:$0x3]  ;;  %vm151_vm4 = vcmask 785408   ;;  %vm156_vm5 = vmor %vm155_vm3, %vm154_vm2  ;;  %s219_s23 = sshll.u32 %s358_s22, 4  ;;  %s221_s26 = sshll.u32 %s403_s2, 4  ;;  %s220_s23 = int_to_ptr.vmem [resolvable:$true] %s219_s23  ;;  %s222_s26 = int_to_ptr.hbm [resolvable:$true] %s221_s26 }
   0xf   :  { %254 = vrot.lane.b32.xlu1 %v253_v4, %s356_s1  ;;  %64 = vmatpush.msra.mxu0 %v82_v2  ;;  %v77_v15 = vld [vmem:[#allocation2] sm:$0x3]  ;;  %vm212_vm6 = vcmask 517376  }
  0x10   :  { %264 = vrot.lane.b32.xlu2 %v263_v8, %s356_s1  ;;  %v42_v16 = vld [vmem:[#allocation2] sm:$0x3] }
  0x11   :  { %65 = vmatpush.msra.mxu0 %v80_v7 }
  0x13   :  { %66 = vmatpush.msra.mxu0 %v78_v10 }
  0x14   :  { %232 = vmatmul.msk.f32.vlgmr.msra.gmra.mxu0 %vm47_vm0, %v42_v16 }
  0x16   :  { %249 = vrot.lane.b32.xlu0 %v248_v11, %s356_s1 }
  0x17   :  { %259 = vrot.lane.b32.xlu1 %v258_v12, %s355_s0 }
  0x18   :  { %269 = vrot.lane.b32.xlu2 %v268_v13, %s356_s1 }
  0x1e   :  { %164 = vrot.lane.b32.xlu0 %v158_v14, %s357_s21 }
  0x1f   :  { %87 = vrot.lane.b32.xlu1 %v77_v15, %s355_s0 }
  0x20   :  { %143 = vrot.lane.b32.xlu2 %v77_v15, %s357_s21 }
  0x26   :  { %204 = vrot.lane.b32.xlu0 %v158_v14, %s356_s1 }
  0x27   :  { %71 = vrot.lane.b32.xlu1 %v42_v16, %s355_s0 }
  0x6a   :  { %v265_v17 = vpop.permute.xlu2 %264 }
  0x6b   :  { %v267_v27 = vunpack.i.h.bf16 %v265_v17  ;;  %v266_v28 = vunpack.i.l.bf16 %v265_v17 }
  0x6d   :  { %v114_v37 = vsel %vm47_vm0, %v266_v28, %v267_v27 }
  0x72   :  { %v270_v22 = vpop.permute.xlu2 %269 }
  0x73   :  { %v272_v34 = vunpack.i.h.bf16 %v270_v22  ;;  %v271_v35 = vunpack.i.l.bf16 %v270_v22 }
  0x75   :  { %v113_v38 = vsel %vm47_vm0, %v271_v35, %v272_v34 }
  0x7a   :  { %v144_v41 = vpop.permute.xlu2 %143 }
  0x80   :  { %v245_v18 = vpop.permute.xlu0 %244 }
  0x81   :  { %v255_v19 = vpop.permute.xlu1 %254  ;;  %v246_v20 = vunpack.i.l.bf16 %v245_v18  ;;  %v247_v21 = vunpack.i.h.bf16 %v245_v18 }
  0x82   :  { %v257_v23 = vunpack.i.h.bf16 %v255_v19  ;;  %v256_v24 = vunpack.i.l.bf16 %v255_v19 }
  0x83   :  { %196 = vmatpush.msra.mxu2 %v246_v20 }
  0x84   :  { %v115_v36 = vsel %vm47_vm0, %v256_v24, %v257_v23 }
  0x85   :  { %197 = vmatpush.msra.mxu2 %v247_v21 }
  0x88   :  { %v250_v25 = vpop.permute.xlu0 %249 }
  0x89   :  { %v260_v26 = vpop.permute.xlu1 %259  ;;  %v252_v29 = vunpack.i.h.bf16 %v250_v25  ;;  %v251_v30 = vunpack.i.l.bf16 %v250_v25 }
  0x8a   :  { %v261_v31 = vunpack.i.l.bf16 %v260_v26  ;;  %v262_v32 = vunpack.i.h.bf16 %v260_v26 }
  0x8b   :  { %v116_v33 = vsel %vm47_vm0, %v251_v30, %v252_v29 }
  0x8c   :  { %198 = vmatpush.msra.mxu2 %v261_v31  ;;  %135 = vmatpush.msra.mxu1 %v116_v33 }
  0x8e   :  { %199 = vmatpush.msra.mxu2 %v262_v32  ;;  %136 = vmatpush.msra.mxu1 %v115_v36 }
  0x90   :  { %v165_v39 = vpop.permute.xlu0 %164  ;;  %137 = vmatpush.msra.mxu1 %v114_v37 }
  0x91   :  { %v88_v40 = vpop.permute.xlu1 %87  ;;  %234 = vmatmul.msk.f32.vlgmr.msra.gmra.mxu2 %vm47_vm0, %v165_v39  ;;  %v68_v48 = vpop.f32.mrf.mxu0 }
  0x92   :  { %138 = vmatpush.msra.mxu1 %v113_v38 }
  0x93   :  { %233 = vmatmul.msk.f32.vlgmr.msra.gmra.mxu1 %vm47_vm0, %v88_v40 }
  0x98   :  { %v205_v44 = vpop.permute.xlu0 %204 }
  0x99   :  { %v72_v47 = vpop.permute.xlu1 %71 }
  0x9a   :  { %v74_v49 = vmul.f32 %v72_v47, %v68_v48 }
  0x9c   :  { %76 = vst.msk [vmem:[#allocation7] sm:$0x3] %vm75_vm1, %v74_v49 }
 0x110   :  { %v140_v42 = vpop.f32.mrf.mxu1 }
 0x111   :  { %v146_v43 = vmul.f32 %v144_v41, %v140_v42 }
 0x113   :  { %148 = vrot.lane.b32.xlu2 %v146_v43, %s355_s0 }
 0x114   :  { %v201_v45 = vpop.f32.mrf.mxu2 }
 0x115   :  { %v207_v46 = vmul.f32 %v205_v44, %v201_v45 }
 0x117   :  { %209 = vrot.lane.b32.xlu0 %v207_v46, %s356_s1 }
 0x16d   :  { %v149_v50 = vpop.permute.xlu2 %148 }
 0x16e   :  { %v150_v51 = vrot.slane %v149_v50, 6 }
 0x170   :  { %v152_v52 = vsel %vm151_vm4, %v150_v51, %v149_v50 }
 0x171   :  { %157 = vst.msk [vmem:[#allocation7] sm:$0xf] %vm156_vm5, %v152_v52 }
 0x189   :  { %v210_v53 = vpop.permute.xlu0 %209 }
 0x18a   :  { %213 = vst.msk [vmem:[#allocation7 + $0x2] sm:$0x3] %vm212_vm6, %v210_v53 }
 0x18b   :  { %224 = dma.vmem_to_hbm [thread:$0]  %s220_s23, 64, %s222_s26, [#allocation4]  }
 0x18c   :  { %349 = dma.done.wait [#allocation4], 64  }
 0x18d   :  { %350 = vsyncadd [#allocation4], 4294967232 }
 0x18e   :  { %229 = vsyncpa [#allocation3], 1 }
 0x18f   :  { %230 = vsyncpa [#allocation6], 1 }
 0x190   :  { %231 = vsyncpa [#allocation4], 1 }

</bundles_post_ra>
